<compile_context>
chip_gen: v7x
topology: tpu7x:2x2x1
jax: 0.10.0
libtpu: 0.0.40
codegen_flags: <defaults>
</compile_context>

<pallas_src>
import functools

import jax
import jax.numpy as jnp
from jax import lax
from jax.experimental import pallas as pl
from jax.experimental.pallas import tpu as pltpu


def _round_up(a, b):
    return ((a + b - 1) // b) * b


def _label_smoothing_kernel(x_ref, t_ref, o_ref, *, confidence, smoothing,
                            n_rows, tm, tiles_per_shard, num_classes,
                            target_is_index):
    s = pl.program_id(0)          # megacore shard           ("parallel")
    t = pl.program_id(1)          # row tile within shard    ("arbitrary")

    @pl.when(t == 0)
    def _():
        o_ref[...] = jnp.zeros_like(o_ref)

    # Global row ids of this tile; mask rows past the true N (partial tiles).
    row0 = (s * tiles_per_shard + t) * tm
    row_ids = row0 + lax.broadcasted_iota(jnp.int32, (tm, 1), 0)
    row_mask = row_ids < n_rows                                    # (tm, 1)

    # Mask invalid rows to 0 BEFORE exp/log so padded/stale data can't poison
    # the reductions (0 rows contribute a finite value that is masked later).
    x = jnp.where(row_mask, x_ref[...].astype(jnp.float32), 0.0)   # (tm, C)

    # Numerically stable log-softmax pieces, without materializing logp.
    m = jnp.max(x, axis=-1, keepdims=True)                         # (tm, 1)
    z = x - m
    lse = jnp.log(jnp.sum(jnp.exp(z), axis=-1, keepdims=True))     # (tm, 1)
    sum_z = jnp.sum(z, axis=-1, keepdims=True)                     # (tm, 1)

    if target_is_index:
        # Integer class indices: build the one-hot selection in-register.
        tgt = t_ref[...]                                           # (tm, 1) i32
        col = lax.broadcasted_iota(jnp.int32, (tm, num_classes), 1)
        z_at_t = jnp.sum(jnp.where(col == tgt, z, 0.0),
                         axis=-1, keepdims=True)                   # (tm, 1)
        nll = lse - z_at_t                                         # sum(t) == 1
    else:
        tt = jnp.where(row_mask, t_ref[...].astype(jnp.float32), 0.0)
        sum_t = jnp.sum(tt, axis=-1, keepdims=True)
        sum_zt = jnp.sum(z * tt, axis=-1, keepdims=True)
        nll = lse * sum_t - sum_zt                                 # (tm, 1)

    smooth = lse - sum_z * (1.0 / num_classes)                     # (tm, 1)
    per_row = confidence * nll + smoothing * smooth
    per_row = jnp.where(row_mask, per_row, 0.0)

    # Accumulate the tile's contribution into this shard's resident partial sum
    # (broadcast scalar over the (8, 128) block; wrapper reads lane/sublane 0).
    o_ref[...] += jnp.sum(per_row)


def label_smoothing_loss(x, target, *, smoothing=0.1, training=True,
                         block_rows=None):
    """x: [N, C] logits.

    training=True : target is [N, C] float (one-hot / soft labels).
    training=False: target is [N] int class indices (cross_entropy semantics).
    Returns a scalar loss (mean over rows).
    """
    N, C = x.shape
    if training:
        target_is_index = False
        tgt = target
        tgt_row_bytes = C * jnp.dtype(target.dtype).itemsize
        smooth_coef = float(smoothing)
    else:
        target_is_index = True
        tgt = target.astype(jnp.int32).reshape(N, 1)
        tgt_row_bytes = 4
        smooth_coef = 0.0
    confidence = 1.0 - smooth_coef

    # Tile sizing: 2 inputs x 2 pipeline buffers must stay under the smallest
    # default scoped-VMEM budget (v5e: 16 MiB) -> ~12 MiB of input buffers.
    x_row_bytes = C * jnp.dtype(x.dtype).itemsize
    if block_rows is None:
        budget = 12 * 1024 * 1024
        block_rows = budget // (2 * (x_row_bytes + tgt_row_bytes))
    tm = max(8, min(int(block_rows), 1024, _round_up(N, 8)))
    tm = (tm // 8) * 8

    total_blocks = pl.cdiv(N, tm)
    # Megacore (v7x): split the row blocks over 2 TensorCores when they divide
    # evenly (guarantees every block's origin stays < N -> only the last block
    # per shard can be partial, handled by the in-kernel row mask).
    if total_blocks % 2 == 0:
        num_shards, tiles = 2, total_blocks // 2
    else:
        num_shards, tiles = 1, total_blocks

    def row_map(s, t):
        return (s * tiles + t, 0)

    kernel = functools.partial(
        _label_smoothing_kernel,
        confidence=confidence, smoothing=smooth_coef, n_rows=N, tm=tm,
        tiles_per_shard=tiles, num_classes=C, target_is_index=target_is_index)

    tgt_block = (tm, 1) if target_is_index else (tm, C)

    partials = pl.pallas_call(
        kernel,
        out_shape=jax.ShapeDtypeStruct((num_shards * 8, 128), jnp.float32),
        grid=(num_shards, tiles),
        in_specs=[pl.BlockSpec((tm, C), row_map),
                  pl.BlockSpec(tgt_block, row_map)],
        out_specs=pl.BlockSpec((8, 128), lambda s, t: (s, 0)),
        compiler_params=pltpu.CompilerParams(
            dimension_semantics=("parallel", "arbitrary")),
    )(x, tgt)

    # One partial sum per shard (replicated over its (8,128) block); finish the
    # mean over the true N in the wrapper.
    return partials[::8, 0].sum() / N


def _reference_train(x, target_soft, smoothing):
    # pure-JAX reference of the PyTorch training-branch formula
    logp = jax.nn.log_softmax(x.astype(jnp.float32), axis=-1)
    nll = -(logp * target_soft).sum(-1)
    smooth = -logp.mean(-1)
    return ((1.0 - smoothing) * nll + smoothing * smooth).mean()


if __name__ == "__main__":
    key = jax.random.PRNGKey(0)
    kx, kt, kx2 = jax.random.split(key, 3)

    N, C = 32, 256                      # small answer-classification logits
    x = jax.random.normal(kx, (N, C), jnp.float32) * 2.0
    tgt_idx = jax.random.randint(kt, (N,), 0, C)
    tgt_soft = jax.nn.one_hot(tgt_idx, C, dtype=jnp.float32)

    # 1) training branch — even row split (exercises the 2-shard parallel axis)
    loss_train = label_smoothing_loss(x, tgt_soft, smoothing=0.1,
                                      training=True, block_rows=8)
    ref_train = _reference_train(x, tgt_soft, 0.1)

    # 2) eval branch — integer targets, no one-hot materialized in HBM
    loss_eval = label_smoothing_loss(x, tgt_idx, smoothing=0.1,
                                     training=False, block_rows=8)
    ref_eval = _reference_train(x, tgt_soft, 0.0)

    # 3) training branch — N not a multiple of the tile (partial-tile masking)
    N2 = 20
    x2 = jax.random.normal(kx2, (N2, C), jnp.float32)
    idx2 = jax.random.randint(kt, (N2,), 0, C)
    soft2 = jax.nn.one_hot(idx2, C, dtype=jnp.float32)
    loss_part = label_smoothing_loss(x2, soft2, smoothing=0.1,
                                     training=True, block_rows=8)
    ref_part = _reference_train(x2, soft2, 0.1)

    jax.block_until_ready((loss_train, loss_eval, loss_part))

    assert jnp.allclose(loss_train, ref_train, rtol=1e-5, atol=1e-5), \
        (float(loss_train), float(ref_train))
    assert jnp.allclose(loss_eval, ref_eval, rtol=1e-5, atol=1e-5), \
        (float(loss_eval), float(ref_eval))
    assert jnp.allclose(loss_part, ref_part, rtol=1e-5, atol=1e-5), \
        (float(loss_part), float(ref_part))

    print("KERNEL_OK")
</pallas_src>

<mosaic_0001>
module attributes {stable_mosaic.version = 11 : i64} {
  func.func @_label_smoothing_kernel(%arg0: i32, %arg1: i32, %arg2: memref<8x256xf32, #tpu.memory_space<vmem>>, %arg3: memref<8x256xf32, #tpu.memory_space<vmem>>, %arg4: memref<8x128xf32, #tpu.memory_space<vmem>>) attributes {dimension_semantics = [#tpu.dimension_semantics<parallel>, #tpu.dimension_semantics<arbitrary>], iteration_bounds = array<i64: 2, 2>, scalar_prefetch = 0 : i64, scratch_operands = 0 : i64, tpu.core_type = #tpu.core_type<tc>, window_params = [{transform_indices = @transform_0, window_bounds = array<i64: 8, 256>}, {transform_indices = @transform_1, window_bounds = array<i64: 8, 256>}, {transform_indices = @transform_2, window_bounds = array<i64: 8, 128>}]} {
    %c0_i32 = arith.constant 0 : i32
    %0 = arith.cmpi eq, %arg1, %c0_i32 : i32
    %1 = arith.extui %0 : i1 to i32
    %c0_i32_0 = arith.constant 0 : i32
    %2 = arith.cmpi ne, %1, %c0_i32_0 : i32
    scf.if %2 {
      %cst_19 = arith.constant 0.000000e+00 : f32
      %56 = vector.broadcast %cst_19 : f32 to vector<8x128xf32>
      %c0_20 = arith.constant 0 : index
      %c0_21 = arith.constant 0 : index
      %57 = vector.load %arg4[%c0_20, %c0_21] : memref<8x128xf32, #tpu.memory_space<vmem>>, vector<8x128xf32>
      tpu.vector_store %arg4[%c0_20, %c0_21], %56 {strides = array<i32>} : memref<8x128xf32, #tpu.memory_space<vmem>>, vector<8x128xf32>,
    } else {
    }
    %c2_i32 = arith.constant 2 : i32
    %3 = arith.muli %arg0, %c2_i32 : i32
    %4 = arith.addi %3, %arg1 : i32
    %c8_i32 = arith.constant 8 : i32
    %5 = arith.muli %4, %c8_i32 : i32
    %6 = tpu.iota {dimensions = array<i32: 0>} : vector<8x1xi32>
    %7 = vector.broadcast %5 : i32 to vector<8x1xi32>
    %8 = arith.addi %7, %6 : vector<8x1xi32>
    %c32_i32 = arith.constant 32 : i32
    %9 = vector.broadcast %c32_i32 : i32 to vector<8x1xi32>
    %10 = arith.cmpi slt, %8, %9 : vector<8x1xi32>
    %c0 = arith.constant 0 : index
    %c0_1 = arith.constant 0 : index
    %11 = vector.load %arg2[%c0, %c0_1] : memref<8x256xf32, #tpu.memory_space<vmem>>, vector<8x256xf32>
    %cst = arith.constant 0.000000e+00 : f32
    %12 = vector.shape_cast %10 : vector<8x1xi1> to vector<8x1xi1>
    %13 = vector.broadcast %12 : vector<8x1xi1> to vector<8x256xi1>
    %14 = vector.broadcast %cst : f32 to vector<8x256xf32>
    %15 = arith.select %13, %11, %14 : vector<8x256xi1>, vector<8x256xf32>
    %cst_2 = arith.constant dense<0xFF800000> : vector<8xf32>
    %16 = vector.multi_reduction <maximumf>, %15, %cst_2 [1] : vector<8x256xf32> to vector<8xf32>
    %17 = vector.shape_cast %16 : vector<8xf32> to vector<8x1xf32>
    %18 = vector.broadcast %17 : vector<8x1xf32> to vector<8x256xf32>
    %19 = arith.subf %15, %18 : vector<8x256xf32>
    %20 = math.exp %19 : vector<8x256xf32>
    %cst_3 = arith.constant dense<0.000000e+00> : vector<8xf32>
    %21 = vector.multi_reduction <add>, %20, %cst_3 [1] : vector<8x256xf32> to vector<8xf32>
    %22 = vector.shape_cast %21 : vector<8xf32> to vector<8x1xf32>
    %23 = math.log %22 : vector<8x1xf32>
    %cst_4 = arith.constant dense<0.000000e+00> : vector<8xf32>
    %24 = vector.multi_reduction <add>, %19, %cst_4 [1] : vector<8x256xf32> to vector<8xf32>
    %25 = vector.shape_cast %24 : vector<8xf32> to vector<8x1xf32>
    %c0_5 = arith.constant 0 : index
    %c0_6 = arith.constant 0 : index
    %26 = vector.load %arg3[%c0_5, %c0_6] : memref<8x256xf32, #tpu.memory_space<vmem>>, vector<8x256xf32>
    %cst_7 = arith.constant 0.000000e+00 : f32
    %27 = vector.shape_cast %10 : vector<8x1xi1> to vector<8x1xi1>
    %28 = vector.broadcast %27 : vector<8x1xi1> to vector<8x256xi1>
    %29 = vector.broadcast %cst_7 : f32 to vector<8x256xf32>
    %30 = arith.select %28, %26, %29 : vector<8x256xi1>, vector<8x256xf32>
    %cst_8 = arith.constant dense<0.000000e+00> : vector<8xf32>
    %31 = vector.multi_reduction <add>, %30, %cst_8 [1] : vector<8x256xf32> to vector<8xf32>
    %32 = vector.shape_cast %31 : vector<8xf32> to vector<8x1xf32>
    %33 = arith.mulf %19, %30 : vector<8x256xf32>
    %cst_9 = arith.constant dense<0.000000e+00> : vector<8xf32>
    %34 = vector.multi_reduction <add>, %33, %cst_9 [1] : vector<8x256xf32> to vector<8xf32>
    %35 = vector.shape_cast %34 : vector<8xf32> to vector<8x1xf32>
    %36 = arith.mulf %23, %32 : vector<8x1xf32>
    %37 = arith.subf %36, %35 : vector<8x1xf32>
    %cst_10 = arith.constant 3.906250e-03 : f32
    %38 = vector.broadcast %cst_10 : f32 to vector<8x1xf32>
    %39 = arith.mulf %25, %38 : vector<8x1xf32>
    %40 = arith.subf %23, %39 : vector<8x1xf32>
    %cst_11 = arith.constant 0.899999976 : f32
    %41 = vector.broadcast %cst_11 : f32 to vector<8x1xf32>
    %42 = arith.mulf %41, %37 : vector<8x1xf32>
    %cst_12 = arith.constant 1.000000e-01 : f32
    %43 = vector.broadcast %cst_12 : f32 to vector<8x1xf32>
    %44 = arith.mulf %43, %40 : vector<8x1xf32>
    %45 = arith.addf %42, %44 : vector<8x1xf32>
    %cst_13 = arith.constant 0.000000e+00 : f32
    %46 = vector.broadcast %cst_13 : f32 to vector<8x1xf32>
    %47 = arith.select %10, %45, %46 : vector<8x1xi1>, vector<8x1xf32>
    %c0_14 = arith.constant 0 : index
    %c0_15 = arith.constant 0 : index
    %48 = vector.load %arg4[%c0_14, %c0_15] : memref<8x128xf32, #tpu.memory_space<vmem>>, vector<8x128xf32>
    %49 = vector.shape_cast %47 : vector<8x1xf32> to vector<1x8x1xf32>
    %cst_16 = arith.constant dense<0.000000e+00> : vector<1xf32>
    %50 = vector.multi_reduction <add>, %49, %cst_16 [1, 2] : vector<1x8x1xf32> to vector<1xf32>
    %51 = vector.shape_cast %50 : vector<1xf32> to vector<1x1x1xf32>
    %52 = vector.extract %51[0, 0, 0] : f32 from vector<1x1x1xf32>
    %53 = vector.broadcast %52 : f32 to vector<8x128xf32>
    %54 = arith.addf %48, %53 : vector<8x128xf32>
    %c0_17 = arith.constant 0 : index
    %c0_18 = arith.constant 0 : index
    %55 = vector.load %arg4[%c0_17, %c0_18] : memref<8x128xf32, #tpu.memory_space<vmem>>, vector<8x128xf32>
    tpu.vector_store %arg4[%c0_17, %c0_18], %54 {strides = array<i32>} : memref<8x128xf32, #tpu.memory_space<vmem>>, vector<8x128xf32>,
    return
  }
  func.func @transform_0(%arg0: i32, %arg1: i32) -> (i32, i32) {
    %c2_i32 = arith.constant 2 : i32
    %0 = arith.muli %arg0, %c2_i32 : i32
    %1 = arith.addi %0, %arg1 : i32
    %c0_i32 = arith.constant 0 : i32
    %c0_i32_0 = arith.constant 0 : i32
    return %1, %c0_i32 : i32, i32
  }
  func.func @transform_1(%arg0: i32, %arg1: i32) -> (i32, i32) {
    %c2_i32 = arith.constant 2 : i32
    %0 = arith.muli %arg0, %c2_i32 : i32
    %1 = arith.addi %0, %arg1 : i32
    %c0_i32 = arith.constant 0 : i32
    %c0_i32_0 = arith.constant 0 : i32
    return %1, %c0_i32 : i32, i32
  }
  func.func @transform_2(%arg0: i32, %arg1: i32) -> (i32, i32) {
    %c0_i32 = arith.constant 0 : i32
    %c0_i32_0 = arith.constant 0 : i32
    return %arg0, %c0_i32 : i32, i32
  }
}

</mosaic_0001>

<bundles_post_ra>
// kernel: tpu_custom_call.1
= control target key start
LH: loop header
LB: loop body
LE: loop exit
PB: predicated region body
PF: predicated region fallthrough
CT: control target
= control target key end

     0   :  { %s1060_s0 = inlined_call_operand.hbm [shape: f32[32,256], index: 0, kind: input, shape index: {}]   ;;  %s1061_s1 = inlined_call_operand.hbm [shape: f32[32,256], index: 1, kind: input, shape index: {}]   ;;  %s1062_s2 = inlined_call_operand.hbm [shape: f32[16,128], index: 2, kind: output, shape index: {}]  }
   0x1   :  { %1069 = sst [smem:[#allocation13_spill]] %s1060_s0 }
   0x2   :  { %7 = vsyncpa [#allocation3], 0 }
   0x3   :  { %9 = vsyncpa [#allocation3 + $0x1], 0 }
   0x4   :  { %10 = vsyncpa [#allocation6], 0 }
   0x5   :  { %12 = vsyncpa [#allocation6 + $0x1], 0 }
   0x6   :  { %13 = vsyncpa [#allocation4], 0 }
   0x7   :  { %15 = vsyncpa [#allocation4 + $0x1], 0  ;;  %s771_s9 = smov 0   ;;  %s773_s10 = smov 0  }
   0x8   :  { %s775_s11 = smov 0   ;;  %s777_s12 = smov 0  }
   0x9   :  { %s779_s13 = smov 0   ;;  %s781_s14 = smov 0  }
   0xa   :  { %s783_s15 = smov 0   ;;  %s785_s16 = smov 0  }
   0xb   :  { %s787_s17 = smov 0   ;;  %s789_s18 = smov 0  }
   0xc   :  { %s791_s19 = smov 0  }
   0xd LB: > { %s419_s20 = sadd.s32 4294967295, %s750_s19   ;;  %s420_s21 = sadd.s32 4294967294, %s750_s19   ;;  %s750_s19 = sphi %s791_s19, %s21_s19   ;;  %s746_s18 = sphi %s789_s18, %s1098_s18   ;;  %s742_s17 = sphi %s787_s17, %s1097_s17   ;;  %s738_s16 = sphi %s785_s16, %s1096_s16   ;;  %s734_s15 = sphi %s783_s15, %s1095_s15   ;;  %s730_s14 = sphi %s781_s14, %s1094_s14   ;;  %s726_s13 = sphi %s779_s13, %s1093_s13   ;;  %s722_s12 = sphi %s777_s12, %s1092_s12   ;;  %s718_s11 = sphi %s775_s11, %s1091_s11   ;;  %s714_s10 = sphi %s773_s10, %s1090_s10   ;;  %s710_s9 = sphi %s771_s9, %s1089_s9  }
   0xe   : > { %s30_s22 = sadd.s32 1, %s742_s17  ;;  %s33_s23 = sadd.s32 1, %s746_s18 }
   0xf   : > { %p31_p0 = scmp.ge.s32.totalorder %s30_s22, 2  ;;  %s421_s24 = sshll.u32 %s746_s18, 1 }
  0x10   : > { %s830_s25 = sadd.s32 %s742_s17, %s421_s24  ;;  %s44_s26 = sadd.s32 1, %s730_s14 }
  0x11   : > { %s1100_s22 = smov (%p31_p0, %s30_s22), 0  ;;  %s1102_s23 = smov (!%p31_p0, %s33_s23), %s746_s18 }
  0x12   : > { %1070 = sst [smem:[#allocation11_spill]] %s1100_s22  ;;  %p51_p1 = scmp.ne.s32.totalorder %s730_s14, %s726_s13 }
  0x13   : > { %p52_p2 = scmp.eq.s32.totalorder %s750_s19, 0  ;;  %p35_p3 = scmp.ge.s32.totalorder %s1102_s23, 2 }
  0x14   : > { %p57_p4 = scmp.ne.s32.totalorder %s726_s13, %s722_s12  ;;  %p58_p6 = scmp.eq.s32.totalorder %s419_s20, 0 }
  0x15   : > { %p840_p5 = por %p52_p2, %p51_p1  ;;  %s1104_s23 = smov (%p35_p3, %s1102_s23), 0 }
  0x16   : > { %1072 = sst [smem:[#allocation12_spill]] %s1104_s23  ;;  %p846_p7 = por %p58_p6, %p57_p4 }
  0x17   : > { %s100_s29 = sadd.s32 1, %s718_s11  ;;  %s422_s30 = sshll.u32 %s1104_s23, 1 }
  0x18   : > { %s1073_s28 = scalar_select %p846_p7, 1, 0 }
  0x19   : > { %s97_s3 = ssub.s32 %s746_s18, %s1104_s23  ;;  %s40_s4 = sadd.s32 %s422_s30, %s1100_s22 }
  0x1a   : > { %p98_p8 = scmp.eq.s32.totalorder %s97_s3, 0  ;;  %s41_s5 = ssub.s32 %s830_s25, %s40_s4 }
  0x1b   : > { %p110_p9 = scmp.ne.s32.totalorder %s718_s11, %s714_s10  ;;  %p42_p10 = scmp.eq.s32.totalorder %s41_s5, 0 }
  0x1c   : > { %p111_p11 = scmp.eq.s32.totalorder %s419_s20, 3  ;;  %p116_p13 = scmp.ne.s32.totalorder %s714_s10, %s710_s9 }
  0x1d   : > { %s859_s6 = scalar_select %p98_p8, %s718_s11, %s100_s29  }
  0x1e   : > { %s862_s7 = scalar_select %p42_p10, %s730_s14, %s44_s26  }
  0x1f   : > { %p864_p12 = por %p111_p11, %p110_p9  ;;  %p117_p0 = scmp.eq.s32.totalorder %s420_s21, 3 }
  0x20   : > { %p467_p1 = scmp.lt.s32.totalorder %s750_s19, 4  ;;  %s874_s12 = sand.u32 1, %s730_s14  }
  0x21   : > { %s1074_s8 = scalar_select %p864_p12, 1, 0 }
  0x22   : > { %p876_p2 = por %p117_p0, %p116_p13  ;;  %s1063_s24 = sshll.u32 %s874_s12, 4 }
  0x23   : > { %s1064_s26 = sshll.u32 %s830_s25, 8  ;;  %s1076_s0 = sld [smem:[#allocation13_spill]] }
  0x24   : > { %s1075_s20 = scalar_select %p876_p2, 1, 0 }
  0x25   : > { %s141_s21 = scalar_lea.vmem [#allocation2], %s1063_s24  ;;  %p893_p3 = pnand %p467_p1, %p840_p5 }
  0x26   : > { %s151_s4 = sshll.u32 %s141_s21, 4  ;;  %s138_s29 = scalar_lea.sflag [#allocation3], %s874_s12  ;;  %s897_s4 = int_to_ptr.vmem [resolvable:$true] %s151_s4 }
  0x27   : > { %p566_p9 = pneg %p893_p3 }
  0x29   : > { %s887_s3 = scalar_lea.hbm %s1076_s0, %s1064_s26  ;;  %s569_s24 = scalar_lea.hbm %s1076_s0, 1024 }
  0x2a   : > { %s564_s30 = scalar_lea.hbm %s887_s3, 256  ;;  %p570_p5 = scmp.lt.u32.totalorder %s887_s3, %s1076_s0 }
  0x2b   : > { %p565_p8 = scmp.ne.s32.totalorder %s887_s3, %s564_s30  ;;  %p571_p13 = scmp.lt.u32.totalorder %s569_s24, %s564_s30 }
  0x2c   : > { %p573_p1 = scmp.lt.u32.totalorder %s564_s30, %s887_s3 }
  0x2d   : > { %p567_p10 = pnand %p566_p9, %p565_p8  ;;  %p572_p0 = por %p571_p13, %p570_p5 }
  0x2f   : > { %p568_p11 = pneg %p567_p10  ;;  %p574_p4 = por %p573_p1, %p572_p0 }
  0x31   : > { %p575_p6 = pnand %p574_p4, %p568_p11 }
  0x33   : > { %578 = shalt.err (!%p575_p6)
}
  0x34   : > { %s579_s22 = scalar_lea.vmem %s897_s4, 256  ;;  %s752_s27 = smov [#allocation2]  }
  0x35   : > { %p580_p8 = scmp.ne.s32.totalorder %s897_s4, %s579_s22  ;;  %s584_s21 = sshll.u32 %s752_s27, 4  ;;  %s585_s21 = int_to_ptr.vmem [resolvable:$false] %s584_s21 }
  0x36   : > { %s586_s23 = scalar_lea.vmem %s585_s21, 512  ;;  %p587_p12 = scmp.lt.s32.totalorder %s897_s4, %s585_s21 }
  0x37   : > { %p582_p10 = pnand %p580_p8, %p566_p9  ;;  %p588_p5 = scmp.lt.s32.totalorder %s586_s23, %s579_s22 }
  0x39   : > { %p583_p2 = pneg %p582_p10  ;;  %p589_p13 = por %p588_p5, %p587_p12 }
  0x3b   : > { %p590_p0 = pnand %p589_p13, %p583_p2 }
  0x3d   : > { %593 = shalt.err (!%p590_p0)
}
  0x3e   : > { %459 = dma.hbm_to_vmem [thread:$0]  (!%p893_p3), %s887_s3, 256, %s897_s4, %s138_s29  }
  0x3f   : > { %p1078_p4 = scmp.lt.s32.totalorder %s750_s19, 5  ;;  %p1079_p6 = scmp.ge.s32.totalorder %s750_s19, 1 }
  0x40   : > { %s1081_s22 = sshll.u32 %s830_s25, 8  ;;  %s1082_s21 = sshll.u32 %s874_s12, 4 }
  0x41   : > { %p931_p11 = pnand %p1079_p6, %p1078_p4  ;;  %s940_s27 = scalar_lea.hbm %s1061_s1, %s1081_s22 }
  0x42   : > { %s162_s23 = scalar_lea.vmem [#allocation5], %s1082_s21  ;;  %s159_s3 = scalar_lea.sflag [#allocation6], %s874_s12 }
  0x43   : > { %s1080_s24 = scalar_select %p931_p11, 1, 0 }
  0x44   : > { %s172_s0 = sshll.u32 %s162_s23, 4  ;;  %s594_s4 = scalar_lea.hbm %s940_s27, 256  ;;  %s173_s0 = int_to_ptr.vmem [resolvable:$true] %s172_s0 }
  0x45   : > { %p595_p12 = scmp.ne.s32.totalorder %s940_s27, %s594_s4  ;;  %s599_s22 = scalar_lea.hbm %s1061_s1, 1024 }
  0x46   : > { %p600_p8 = scmp.lt.u32.totalorder %s940_s27, %s1061_s1  ;;  %p601_p10 = scmp.lt.u32.totalorder %s599_s22, %s594_s4 }
  0x47   : > { %p597_p2 = pnand %p595_p12, %p566_p9  ;;  %p603_p13 = scmp.lt.u32.totalorder %s594_s4, %s940_s27 }
  0x48   : > { %p602_p5 = por %p601_p10, %p600_p8 }
  0x49   : > { %p598_p1 = pneg %p597_p2 }
  0x4a   : > { %p604_p0 = por %p603_p13, %p602_p5 }
  0x4c   : > { %p605_p4 = pnand %p604_p0, %p598_p1 }
  0x4e   : > { %608 = shalt.err (!%p605_p4)
}
  0x4f   : > { %s609_s12 = scalar_lea.vmem %s173_s0, 256  ;;  %s753_s21 = smov [#allocation5]  }
  0x50   : > { %p610_p6 = scmp.ne.s32.totalorder %s173_s0, %s609_s12  ;;  %s614_s23 = sshll.u32 %s753_s21, 4  ;;  %s615_s23 = int_to_ptr.vmem [resolvable:$false] %s614_s23 }
  0x51   : > { %s616_s25 = scalar_lea.vmem %s615_s23, 512  ;;  %p617_p7 = scmp.lt.s32.totalorder %s173_s0, %s615_s23 }
  0x52   : > { %p612_p12 = pnand %p610_p6, %p566_p9  ;;  %p618_p11 = scmp.lt.s32.totalorder %s616_s25, %s609_s12 }
  0x54   : > { %p613_p2 = pneg %p612_p12  ;;  %p619_p8 = por %p618_p11, %p617_p7 }
  0x56   : > { %p620_p10 = pnand %p619_p8, %p613_p2 }
  0x58   : > { %623 = shalt.err (!%p620_p10)
}
  0x59   : > { %462 = dma.hbm_to_vmem [thread:$0]  (!%p893_p3), %s940_s27, 256, %s173_s0, %s159_s3  }
  0x5a   : > { %p1083_p1 = scmp.ne.s32.totalorder %s1080_s24, 0 }
  0x5b   : > { %s183_s4 = sand.u32 (!%p1083_p1), 1, %s726_s13   ;;  %p1084_p9 = scmp.ne.s32.totalorder (!%p1083_p1), %s1073_s28, 0 }
  0x5c   : > { %181 = sbr.rel (%p1083_p1) target bundleno = 667 (0x29b), region = 28  ;;  %s436_s29 = sshll.u32 (!%p1083_p1), %s183_s4, 4 }
  0x5d   : > { %s184_s22 = scalar_lea.sflag (!%p1083_p1), [#allocation3], %s183_s4  ;;  %s187_s26 = scalar_lea.vmem (!%p1083_p1), [#allocation2], %s436_s29 }
  0x63   : > { %697 = dma.done.wait (%p1084_p9), %s184_s22, 256  }
  0x64   : > { %699 = vsyncadd (%p1084_p9), %s184_s22, 4294967040  ;;  %s193_s30 = scalar_lea.sflag [#allocation6], %s183_s4  ;;  %s196_s12 = scalar_lea.vmem [#allocation5], %s436_s29 }
  0x65   : > { %701 = dma.done.wait (%p1084_p9), %s193_s30, 256  }
  0x66   : > { %703 = vsyncadd (%p1084_p9), %s193_s30, 4294967040  ;;  %s219_s0 = sand.u32 1, %s714_s10   ;;  %p439_p7 = scmp.ne.s32.totalorder %s734_s15, 0 }
  0x67   : > { %s438_s5 = sshll.u32 %s219_s0, 3  ;;  %v754_v0 = vmov (!%p439_p7), 0.0  }
  0x68   : > { %s978_s24 = scalar_lea.vmem [#allocation7], %s438_s5  ;;  %229 = sbr.rel (%p439_p7) target bundleno = 111 (0x6f), region = 40 }
  0x69   : > { %230 = vst [vmem:[%s978_s24] sm:$0xff] (!%p439_p7), %v754_v0 }
  0x6f PF: > { %s440_s27 = sshll.u32 %s738_s16, 1  ;;  %v234_v1 = vlaneseq  ;;  %v239_v5 = vld [vmem:[%s187_s26] sm:$0xff]  ;;  %v240_v6 = vld [vmem:[%s187_s26 + $0x8] sm:$0xff]  ;;  %vm283_vm1 = vcmask 7168   ;;  %s311_s21 = sshll.u32 %s978_s24, 4  ;;  %s997_s21 = int_to_ptr.vmem [resolvable:$true] %s311_s21 }
  0x70   : > { %s232_s28 = sadd.s32 %s734_s15, %s440_s27  ;;  %v262_v13 = vld [vmem:[%s196_s12] sm:$0xff]  ;;  %v263_v14 = vld [vmem:[%s196_s12 + $0x8] sm:$0xff]  ;;  %s443_s15 = sshll.u32 %s738_s16, 7 }
  0x71   : > { %s441_s3 = sshll.u32 %s232_s28, 3  ;;  %v235_v2 = vshrl.u32 %v234_v1, 7  ;;  %v282_v49 = vld [vmem:[%s978_s24] sm:$0xff]  ;;  %s995_s29 = scalar_lea.hbm %s1062_s2, %s443_s15 }
  0x72   : > { %v236_v3 = vstv %s441_s3  ;;  %s298_s22 = scalar_lea.sflag [#allocation4], %s219_s0  ;;  %s624_s26 = scalar_lea.vmem %s997_s21, 128 }
  0x73   : > { %v237_v4 = vadd.s32 %v236_v3, %v235_v2  ;;  %p625_p3 = scmp.ne.s32.totalorder %s997_s21, %s624_s26  ;;  %p1085_p11 = scmp.ne.s32.totalorder %s1074_s8, 0 }
  0x74   : > { %s755_s16 = smov [#allocation7]  }
  0x75   : > { %vm238_vm0 = vcmp.lt.s32.totalorder %v237_v4, 32  ;;  %p626_p5 = pnand %p625_p3, %p1085_p11  ;;  %s628_s30 = sshll.u32 %s755_s16, 4  ;;  %s629_s30 = int_to_ptr.vmem [resolvable:$false] %s628_s30 }
  0x76   : > { %v243_v7 = vsel %vm238_vm0, %v239_v5, 0.0  ;;  %v244_v8 = vsel %vm238_vm0, %v240_v6, 0.0  ;;  %v264_v18 = vsel %vm238_vm0, %v262_v13, 0.0  ;;  %v265_v19 = vsel %vm238_vm0, %v263_v14, 0.0  ;;  %s630_s12 = scalar_lea.vmem %s629_s30, 256  ;;  %p631_p0 = scmp.lt.s32.totalorder %s997_s21, %s629_s30 }
  0x77   : > { %v245_v9 = vmax.f32 %v243_v7, %v244_v8  ;;  %v266_v20 = vadd.f32 %v265_v19, %v264_v18  ;;  %p627_p13 = pneg %p626_p5  ;;  %p632_p4 = scmp.lt.s32.totalorder %s630_s12, %s624_s26 }
  0x79   : > { %246 = vmax.xlane.f32.xlu0 %v245_v9  ;;  %p633_p6 = por %p632_p4, %p631_p0 }
  0x7b   : > { %p634_p12 = pnand %p633_p6, %p627_p13 }
 0x106   : > { %v247_v10 = vpop.xlane.xlu0 %246 }
 0x107   : > { %v248_v11 = vsub.f32 %v243_v7, %v247_v10  ;;  %v249_v12 = vsub.f32 %v244_v8, %v247_v10 }
 0x109   : > { %v250_v15 = vmul.f32 1.442695, %v248_v11  ;;  %v252_v16 = vmul.f32 1.442695, %v249_v12  ;;  %v259_v17 = vadd.f32 %v249_v12, %v248_v11  ;;  %v269_v24 = vmul.f32 %v264_v18, %v248_v11 }
 0x10a   : > { %v270_v25 = vmul.f32 %v265_v19, %v249_v12 }
 0x10b   : > { %558 = vpow2.f32 %v250_v15  ;;  %260 = vadd.xlane.f32.xlu1 %v259_v17 }
 0x10c   : > { %560 = vpow2.f32 %v252_v16  ;;  %v271_v26 = vadd.f32 %v270_v25, %v269_v24 }
 0x10f   : > { %267 = vadd.xlane.f32.xlu1 %v266_v20 }
 0x115   : > { %v559_v21 = vpop.eup %558 }
 0x116   : > { %v561_v22 = vpop.eup %560 }
 0x117   : > { %v254_v23 = vadd.f32 %v561_v22, %v559_v21 }
 0x119   : > { %255 = vadd.xlane.f32.xlu0 %v254_v23 }
 0x11d   : > { %272 = vadd.xlane.f32.xlu0 %v271_v26 }
 0x198   : > { %v261_v28 = vpop.xlane.xlu1 %260 }
 0x199   : > { %v276_v31 = vmul.f32 0.00390625, %v261_v28 }
 0x19c   : > { %v268_v30 = vpop.xlane.xlu1 %267 }
 0x1a6   : > { %v256_v27 = vpop.xlane.xlu0 %255 }
 0x1a7   : > { %562 = vlog2.f32 %v256_v27 }
 0x1aa   : > { %v273_v35 = vpop.xlane.xlu0 %272 }
 0x1b1   : > { %v563_v29 = vpop.eup %562 }
 0x1b2   : > { %v258_v32 = vmul.f32 0.6931472, %v563_v29 }
 0x1b4   : > { %v274_v33 = vmul.f32 %v268_v30, %v258_v32  ;;  %v277_v34 = vsub.f32 %v258_v32, %v276_v31 }
 0x1b6   : > { %v275_v36 = vsub.f32 %v274_v33, %v273_v35  ;;  %v279_v38 = vmul.f32 0.1, %v277_v34 }
 0x1b8   : > { %v278_v37 = vmul.f32 0.9, %v275_v36 }
 0x1ba   : > { %v280_v39 = vadd.f32 %v279_v38, %v278_v37 }
 0x1bc   : > { %v281_v40 = vsel %vm238_vm0, %v280_v39, 0.0 }
 0x1bd   : > { %v284_v41 = vsel %vm283_vm1, %v281_v40, 0.0 }
 0x1be   : > { %285 = vadd.xlane.f32.xlu1 %v284_v41 }
 0x24b   : > { %v286_v42 = vpop.xlane.xlu1 %285 }
 0x24c   : > { %v287_v43 = vrot.slane %v286_v42, 4 }
 0x24e   : > { %v288_v44 = vadd.f32 %v287_v43, %v286_v42 }
 0x250   : > { %v289_v45 = vrot.slane %v288_v44, 2 }
 0x252   : > { %v290_v46 = vadd.f32 %v289_v45, %v288_v44 }
 0x254   : > { %v291_v47 = vrot.slane %v290_v46, 1 }
 0x256   : > { %v292_v48 = vadd.f32 %v291_v47, %v290_v46 }
 0x258   : > { %448 = vpush %v292_v48 }
 0x289   : > { %s449_s23 = spop %448 }
 0x28a   : > { %v294_v50 = vstv %s449_s23 }
 0x28b   : > { %v295_v51 = vadd.f32 %v294_v50, %v282_v49 }
 0x28d   : > { %296 = vst [vmem:[%s978_s24] sm:$0xff] %v295_v51 }
 0x28e   : > { %637 = shalt.err (!%p634_p12)
}
 0x28f   : > { %s638_s0 = scalar_lea.hbm %s995_s29, 128  ;;  %s642_s27 = scalar_lea.hbm %s1062_s2, 256 }
 0x290   : > { %p639_p2 = scmp.ne.s32.totalorder %s995_s29, %s638_s0  ;;  %p643_p1 = scmp.lt.u32.totalorder %s995_s29, %s1062_s2 }
 0x291   : > { %p644_p9 = scmp.lt.u32.totalorder %s642_s27, %s638_s0  ;;  %p646_p3 = scmp.lt.u32.totalorder %s638_s0, %s995_s29 }
 0x292   : > { %p640_p8 = pnand %p639_p2, %p1085_p11 }
 0x293   : > { %p645_p7 = por %p644_p9, %p643_p1 }
 0x294   : > { %p641_p10 = pneg %p640_p8 }
 0x295   : > { %p647_p5 = por %p646_p3, %p645_p7 }
 0x297   : > { %p648_p13 = pnand %p647_p5, %p641_p10 }
 0x299   : > { %651 = shalt.err (!%p648_p13)
}
 0x29a   : > { %454 = dma.vmem_to_hbm [thread:$0]  (%p1085_p11), %s997_s21, 128, %s995_s29, %s298_s22  }
 0x29b PF: > { %p468_p0 = scmp.ge.s32.totalorder %s750_s19, 2  ;;  %s323_s15 = sand.u32 1, %s710_s9  }
 0x29c   : > { %p1086_p4 = scmp.ne.s32.totalorder %s1075_s20, 0  ;;  %s324_s23 = scalar_lea.sflag [#allocation4], %s323_s15 }
 0x29e   : > { %p464_p6 = pnand %p468_p0, %p1086_p4 }
 0x2a0   : > { %705 = dma.done.wait (!%p464_p6), %s324_s23, 128  }
 0x2a1   : > { %707 = vsyncadd (!%p464_p6), %s324_s23, 4294967168  ;;  %s21_s19 = sadd.s32 1, %s750_s19   ;;  %s1087_s8 = sld [smem:[#allocation11_spill]] }
 0x2a2   : > { %p18_p12 = scmp.ge.s32.totalorder %s21_s19, 6   ;;  %s1088_s21 = sld [smem:[#allocation12_spill]] }
 0x2a3   : > { %s1089_s9 = smov %s714_s10  ;;  %s1090_s10 = smov %s718_s11 }
 0x2a4   : > { %s1091_s11 = smov %s859_s6  ;;  %s1092_s12 = smov %s726_s13 }
 0x2a5   : > { %s1093_s13 = smov %s730_s14  ;;  %s1094_s14 = smov %s862_s7 }
 0x2a6   : > { %s1095_s15 = smov %s742_s17  ;;  %s1096_s16 = smov %s746_s18 }
 0x2a7   : > { %s1097_s17 = smov %s1087_s8  ;;  %20 = sbr.rel (!%p18_p12) target bundleno = 13 (0xd), region = 90 }
 0x2a8   : > { %s1098_s18 = smov %s1088_s21 }
 0x2ae   :  { %329 = vsyncpa [#allocation3], 1 }
 0x2af   :  { %331 = vsyncpa [#allocation3 + $0x1], 1 }
 0x2b0   :  { %332 = vsyncpa [#allocation6], 1 }
 0x2b1   :  { %334 = vsyncpa [#allocation6 + $0x1], 1 }
 0x2b2   :  { %335 = vsyncpa [#allocation4], 1 }
 0x2b3   :  { %337 = vsyncpa [#allocation4 + $0x1], 1 }

</bundles_post_ra>
